<compile_context>
chip_gen: v7x
topology: tpu7x:2x2x1
jax: 0.10.0
libtpu: 0.0.40
codegen_flags: <defaults>
</compile_context>

<pallas_src>
import math

import jax
import jax.numpy as jnp
from jax.experimental import pallas as pl
from jax.experimental.pallas import tpu as pltpu

_LANE = 128


def _round_up(a, b):
    return ((a + b - 1) // b) * b


def _vmem_budget_bytes():
    """Per-TensorCore VMEM budget (leave headroom for compiler scratch)."""
    cap = 64 * 1024 * 1024                     # conservative default (v7x per-TC)
    try:                                       # one-time hardware query at import
        info = pltpu.get_tpu_info()
        cap = int(getattr(info, "vmem_capacity_bytes", cap)) or cap
    except Exception:                          # emulator / unknown chip: keep default
        pass
    return int(cap * 0.85)                     # ~54 MiB v7x, ~109 MiB v5e/v6e


_VMEM_BUDGET = _vmem_budget_bytes()


# ---------------------------------------------------------------------------
# Kernels
# ---------------------------------------------------------------------------
def _ffn_kernel_resident(x_ref, w1t_ref, b1_ref, w2t_ref, b2_ref, o_ref):
    # nk == 1: full weights resident in VMEM, one grid axis over M tiles.
    h = jnp.dot(x_ref[...], w1t_ref[...], preferred_element_type=jnp.float32)
    h = jnp.maximum(h + b1_ref[...], 0.0)              # bias + ReLU in f32 (VPU)
    y = jnp.dot(h.astype(w2t_ref.dtype), w2t_ref[...],
                preferred_element_type=jnp.float32)
    o_ref[...] = (y + b2_ref[...]).astype(o_ref.dtype)


def _ffn_kernel_stream_direct(x_ref, w1t_ref, b1_ref, w2t_ref, b2_ref, o_ref):
    # nk > 1, f32 output: the output block doubles as the accumulator
    # (it stays VMEM-resident across the inner-dim axis).
    k = pl.program_id(1)

    @pl.when(k == 0)
    def _init():
        o_ref[...] = jnp.zeros_like(o_ref)

    h = jnp.dot(x_ref[...], w1t_ref[...], preferred_element_type=jnp.float32)
    h = jnp.maximum(h + b1_ref[...], 0.0)
    o_ref[...] += jnp.dot(h.astype(w2t_ref.dtype), w2t_ref[...],
                          preferred_element_type=jnp.float32)

    @pl.when(k == pl.num_programs(1) - 1)
    def _finalize():
        o_ref[...] += b2_ref[...]


def _ffn_kernel_stream_scratch(x_ref, w1t_ref, b1_ref, w2t_ref, b2_ref, o_ref,
                               acc_ref):
    # nk > 1, non-f32 output: f32 scratch accumulator, cast once at the end.
    k = pl.program_id(1)

    @pl.when(k == 0)
    def _init():
        acc_ref[...] = jnp.zeros_like(acc_ref)

    h = jnp.dot(x_ref[...], w1t_ref[...], preferred_element_type=jnp.float32)
    h = jnp.maximum(h + b1_ref[...], 0.0)
    acc_ref[...] += jnp.dot(h.astype(w2t_ref.dtype), w2t_ref[...],
                            preferred_element_type=jnp.float32)

    @pl.when(k == pl.num_programs(1) - 1)
    def _finalize():
        o_ref[...] = (acc_ref[...] + b2_ref[...]).astype(o_ref.dtype)


# ---------------------------------------------------------------------------
# Parameter preparation (done ONCE, results stored and reused per call)
# ---------------------------------------------------------------------------
def prepare_ffn_params(w_in, b_in, w_out, b_out, compute_dtype=None):
    """Transpose / pad / cast the weights once.

    w_in:  (inner, model)   b_in:  (inner,)
    w_out: (model, inner)   b_out: (model,)

    Note: bf16 compute_dtype is recommended on v5e/v6e/v7x (native MXU dtype,
    halves weight DMA); accumulation / bias / ReLU stay f32 in the kernel.
    """
    d_inner, d_model = w_in.shape
    assert w_out.shape == (d_model, d_inner)
    cdt = jnp.dtype(compute_dtype if compute_dtype is not None else w_in.dtype)
    dm_p = _round_up(d_model, _LANE)            # lane-dense model dim
    di_p = _round_up(d_inner, _LANE)

    w1t = jnp.pad(w_in.T.astype(cdt), ((0, dm_p - d_model), (0, di_p - d_inner)))
    w2t = jnp.pad(w_out.T.astype(cdt), ((0, di_p - d_inner), (0, dm_p - d_model)))
    # Biases stay f32: added to f32 accumulators (v5e VPU has no bf16).
    b1 = jnp.pad(b_in.astype(jnp.float32), (0, di_p - d_inner)).reshape(1, di_p)
    b2 = jnp.pad(b_out.astype(jnp.float32), (0, dm_p - d_model)).reshape(1, dm_p)

    return dict(w1t=w1t, w2t=w2t, b1=b1, b2=b2,
                d_model=d_model, d_inner=d_inner, compute_dtype=cdt)


# ---------------------------------------------------------------------------
# Tile / VMEM planning (pure Python on static shapes; runs at trace time)
# ---------------------------------------------------------------------------
def _resident_vmem_need(tile_m, dm_p, di_p, cbytes, obytes):
    return (2 * tile_m * dm_p * cbytes                    # x tile (2 buffers)
            + 2 * tile_m * dm_p * obytes                  # out tile (2 buffers)
            + 2 * 2 * dm_p * di_p * cbytes                # full W1^T + W2^T
            + 2 * 2 * (di_p + dm_p) * 4                   # biases
            + tile_m * di_p * (4 + cbytes))               # hidden intermediate


def _stream_vmem_need(tile_m, tile_k, dm_p, cbytes, obytes, use_scratch):
    return (2 * tile_m * dm_p * cbytes                    # x tile
            + 2 * tile_m * dm_p * obytes                  # out tile
            + (tile_m * dm_p * 4 if use_scratch else 0)   # f32 acc scratch
            + 2 * 2 * dm_p * tile_k * cbytes              # W1^T / W2^T tiles
            + 2 * 2 * (tile_k + dm_p) * 4                 # bias tiles
            + tile_m * tile_k * (4 + cbytes))             # hidden intermediate


def _choose_m_tile(M, align, target):
    """M tile: multiple of `align`, <= target, low padding waste, and >=2
    tiles when there is enough work to feed both v7x TensorCores."""
    M_al = _round_up(max(M, 1), align)
    target = max(align, _round_up(target, align))
    if M_al <= target:
        if M_al >= 256:                        # split so the megacore gets 2 tiles
            return _round_up((M_al + 1) // 2, align)
        return M_al
    lo = max(align, min(128, target))
    best_t, best_mp = target, _round_up(M, target)
    t = target
    while t >= lo:
        mp = _round_up(M, t)
        if mp < best_mp:                       # minimize padded-row MXU waste
            best_t, best_mp = t, mp
        t -= align
    return best_t


def _plan(M, dm_p, di_p, cbytes, obytes, out_is_f32, budget, tile_m_req):
    align = 16 if cbytes == 2 else 8
    # Weights-resident fast path: full padded weights + activation tiles fit.
    probe_m = _choose_m_tile(M, align, tile_m_req or 256)
    if _resident_vmem_need(probe_m, dm_p, di_p, cbytes, obytes) <= budget:
        return probe_m, di_p

    # Streamed weights: larger M tile so the per-M-tile weight re-fetch stays
    # hidden under MXU work (v6e needs >~330 rows at 918 TF/s vs ~1.4 TB/s).
    tile_m = _choose_m_tile(M, align, tile_m_req or 512)
    use_scratch = not out_is_f32
    while True:
        t = di_p
        while t >= _LANE:
            if di_p % t == 0 and _stream_vmem_need(
                    tile_m, t, dm_p, cbytes, obytes, use_scratch) <= budget:
                return tile_m, t
            t -= _LANE
        if tile_m <= max(align, 128):
            return tile_m, _LANE               # smallest legal inner tile
        tile_m = max(align, _round_up(tile_m // 2, align))


# ---------------------------------------------------------------------------
# pallas_call builder
# ---------------------------------------------------------------------------
def _ffn_pallas(x2p, params, out_dtype, tile_m, tile_k, budget):
    Mp, dm_p = x2p.shape
    di_p = params["w1t"].shape[1]
    nm = Mp // tile_m
    nk = di_p // tile_k
    resident = (nk == 1)

    cbytes = params["w1t"].dtype.itemsize
    obytes = jnp.dtype(out_dtype).itemsize
    out_is_f32 = jnp.dtype(out_dtype) == jnp.float32

    weight_bytes = (params["w1t"].size + params["w2t"].size) * cbytes
    weight_passes = 1 if resident else nm      # streamed weights re-fetched per M tile
    cost = pl.CostEstimate(
        flops=4 * Mp * dm_p * di_p,
        transcendentals=0,
        bytes_accessed=int(Mp * dm_p * (cbytes + obytes)
                           + weight_passes * weight_bytes
                           + (di_p + dm_p) * 4))

    if resident:
        need = _resident_vmem_need(tile_m, dm_p, di_p, cbytes, obytes)
    else:
        need = _stream_vmem_need(tile_m, tile_k, dm_p, cbytes, obytes,
                                 not out_is_f32)
    vmem_limit = int(min(budget, max(2 * need, 16 * 1024 * 1024)))

    if resident:
        grid = (nm,)
        in_specs = [
            pl.BlockSpec((tile_m, dm_p), lambda i: (i, 0)),   # x rows
            pl.BlockSpec((dm_p, di_p), lambda i: (0, 0)),     # W_in^T  (invariant)
            pl.BlockSpec((1, di_p), lambda i: (0, 0)),        # b_in    (invariant)
            pl.BlockSpec((di_p, dm_p), lambda i: (0, 0)),     # W_out^T (invariant)
            pl.BlockSpec((1, dm_p), lambda i: (0, 0)),        # b_out   (invariant)
        ]
        out_specs = pl.BlockSpec((tile_m, dm_p), lambda i: (i, 0))
        kernel = _ffn_kernel_resident
        scratch = []
        semantics = ("parallel",)
    else:
        grid = (nm, nk)                                        # reduction axis last
        in_specs = [
            pl.BlockSpec((tile_m, dm_p), lambda i, k: (i, 0)),
            pl.BlockSpec((dm_p, tile_k), lambda i, k: (0, k)),
            pl.BlockSpec((1, tile_k), lambda i, k: (0, k)),
            pl.BlockSpec((tile_k, dm_p), lambda i, k: (k, 0)),
            pl.BlockSpec((1, dm_p), lambda i, k: (0, 0)),
        ]
        out_specs = pl.BlockSpec((tile_m, dm_p), lambda i, k: (i, 0))
        if out_is_f32:
            kernel = _ffn_kernel_stream_direct
            scratch = []
        else:
            kernel = _ffn_kernel_stream_scratch
            scratch = [pltpu.VMEM((tile_m, dm_p), jnp.float32)]
        semantics = ("parallel", "arbitrary")

    return pl.pallas_call(
        kernel,
        out_shape=jax.ShapeDtypeStruct((Mp, dm_p), out_dtype),
        grid_spec=pltpu.PrefetchScalarGridSpec(
            num_scalar_prefetch=0,
            grid=grid,
            in_specs=in_specs,
            out_specs=out_specs,
            scratch_shapes=scratch),
        compiler_params=pltpu.CompilerParams(
            dimension_semantics=semantics,
            vmem_limit_bytes=vmem_limit),
        cost_estimate=cost,
    )(x2p, params["w1t"], params["b1"], params["w2t"], params["b2"])


# ---------------------------------------------------------------------------
# Public forward (pure & jittable: wrap with jax.jit, params closed over,
# so the pad/cast/slice fuse with the surrounding graph)
# ---------------------------------------------------------------------------
def position_wise_ffn(x, params, *, tile_m=None):
    """Eval-mode forward. x: (seq_len, batch, model_size); params from
    prepare_ffn_params (pre-transposed / padded / cast once)."""
    seq, bsz, d_model = x.shape
    assert d_model == params["d_model"]
    dm_p, di_p = params["w1t"].shape
    cdt = params["compute_dtype"]
    out_dtype = x.dtype

    cbytes = jnp.dtype(cdt).itemsize
    obytes = jnp.dtype(out_dtype).itemsize
    out_is_f32 = jnp.dtype(out_dtype) == jnp.float32

    M = seq * bsz
    tile_m_eff, tile_k = _plan(M, dm_p, di_p, cbytes, obytes, out_is_f32,
                               _VMEM_BUDGET, tile_m)
    Mp = _round_up(M, tile_m_eff)

    x2 = x.reshape(M, d_model).astype(cdt)
    if Mp != M or dm_p != d_model:
        x2 = jnp.pad(x2, ((0, Mp - M), (0, dm_p - d_model)))

    out_p = _ffn_pallas(x2, params, out_dtype, tile_m_eff, tile_k, _VMEM_BUDGET)

    out = out_p if (Mp == M and dm_p == d_model) else out_p[:M, :d_model]
    return out.reshape(seq, bsz, d_model)


# ---------------------------------------------------------------------------
# Demo / correctness check
# ---------------------------------------------------------------------------
if __name__ == "__main__":
    # Small shapes consistent with the module's forward:
    # input (seq_len, batch, model_size); inner_size is the FFN hidden width.
    seq_len, batch, model_size, inner_size = 8, 2, 32, 64

    key = jax.random.PRNGKey(0)
    k_x, k_w1, k_w2, k_b1, k_b2 = jax.random.split(key, 5)

    # Deterministic "mu" init, mirroring reset_parameters():
    #   mu ~ Normal(0, sqrt(2 / (model_size + inner_size)))
    std_ = math.sqrt(2.0 / (model_size + inner_size))
    w_in = std_ * jax.random.normal(k_w1, (inner_size, model_size), jnp.float32)
    w_out = std_ * jax.random.normal(k_w2, (model_size, inner_size), jnp.float32)
    b_in = std_ * jax.random.normal(k_b1, (inner_size,), jnp.float32)
    b_out = std_ * jax.random.normal(k_b2, (model_size,), jnp.float32)

    x = jax.random.normal(k_x, (seq_len, batch, model_size), jnp.float32)

    # Pure-JAX reference of the same forward semantics (eval: weights = mu,
    # dropout is identity).
    y_ref = jnp.maximum(x @ w_in.T + b_in, 0.0) @ w_out.T + b_out

    # f32 path.
    params_f32 = prepare_ffn_params(w_in, b_in, w_out, b_out)          # once
    fwd_f32 = jax.jit(lambda xs: position_wise_ffn(xs, params_f32))
    y = jax.block_until_ready(fwd_f32(x))
    assert y.shape == (seq_len, batch, model_size)
    assert jnp.allclose(y, y_ref, atol=1e-4, rtol=1e-4)

    # bf16 weights/activations, f32 accumulation (native MXU dtype).
    params_bf16 = prepare_ffn_params(w_in, b_in, w_out, b_out,
                                     compute_dtype=jnp.bfloat16)
    fwd_bf16 = jax.jit(lambda xs: position_wise_ffn(xs, params_bf16))
    y_bf16 = jax.block_until_ready(fwd_bf16(x))
    assert y_bf16.shape == (seq_len, batch, model_size)
    assert jnp.allclose(y_bf16, y_ref, atol=1e-1, rtol=5e-2)

    # Non-divisible M (seq*batch = 15) exercises the ragged-row padding path.
    x_odd = jax.random.normal(k_x, (5, 3, model_size), jnp.float32)
    y_odd = jax.block_until_ready(fwd_f32(x_odd))
    y_odd_ref = jnp.maximum(x_odd @ w_in.T + b_in, 0.0) @ w_out.T + b_out
    assert jnp.allclose(y_odd, y_odd_ref, atol=1e-4, rtol=1e-4)

    print("KERNEL_OK")
</pallas_src>

<mosaic_0001>
module attributes {stable_mosaic.version = 11 : i64} {
  func.func @_ffn_kernel_resident(%arg0: i32, %arg1: memref<16x128xf32, #tpu.memory_space<vmem>>, %arg2: memref<128x128xf32, #tpu.memory_space<vmem>>, %arg3: memref<1x128xf32, #tpu.memory_space<vmem>>, %arg4: memref<128x128xf32, #tpu.memory_space<vmem>>, %arg5: memref<1x128xf32, #tpu.memory_space<vmem>>, %arg6: memref<16x128xf32, #tpu.memory_space<vmem>>) attributes {dimension_semantics = [#tpu.dimension_semantics<parallel>], iteration_bounds = array<i64: 1>, scalar_prefetch = 0 : i64, scratch_operands = 0 : i64, tpu.core_type = #tpu.core_type<tc>, window_params = [{transform_indices = @transform_0, window_bounds = array<i64: 16, 128>}, {pipeline_mode = #tpu.pipeline_mode<synchronous>, transform_indices = @transform_1, window_bounds = array<i64: 128, 128>}, {pipeline_mode = #tpu.pipeline_mode<synchronous>, transform_indices = @transform_2, window_bounds = array<i64: 1, 128>}, {pipeline_mode = #tpu.pipeline_mode<synchronous>, transform_indices = @transform_3, window_bounds = array<i64: 128, 128>}, {pipeline_mode = #tpu.pipeline_mode<synchronous>, transform_indices = @transform_4, window_bounds = array<i64: 1, 128>}, {transform_indices = @transform_5, window_bounds = array<i64: 16, 128>}]} {
    %c0 = arith.constant 0 : index
    %c0_0 = arith.constant 0 : index
    %0 = vector.load %arg1[%c0, %c0_0] : memref<16x128xf32, #tpu.memory_space<vmem>>, vector<16x128xf32>
    %c0_1 = arith.constant 0 : index
    %c0_2 = arith.constant 0 : index
    %1 = vector.load %arg2[%c0_1, %c0_2] : memref<128x128xf32, #tpu.memory_space<vmem>>, vector<128x128xf32>
    %cst = arith.constant dense<0.000000e+00> : vector<16x128xf32>
    %2 = tpu.matmul %0, %1, %cst {dimension_numbers = #tpu.dot_dimension_numbers<[1], [0], [0], [1], [0, 0, 1, 1], [], []>} : vector<16x128xf32>, vector<128x128xf32>, vector<16x128xf32> -> vector<16x128xf32>
    %c0_3 = arith.constant 0 : index
    %c0_4 = arith.constant 0 : index
    %3 = vector.load %arg3[%c0_3, %c0_4] : memref<1x128xf32, #tpu.memory_space<vmem>>, vector<1x128xf32>
    %4 = vector.broadcast %3 : vector<1x128xf32> to vector<16x128xf32>
    %5 = arith.addf %2, %4 : vector<16x128xf32>
    %cst_5 = arith.constant 0.000000e+00 : f32
    %6 = vector.broadcast %cst_5 : f32 to vector<16x128xf32>
    %7 = arith.maximumf %5, %6 : vector<16x128xf32>
    %c0_6 = arith.constant 0 : index
    %c0_7 = arith.constant 0 : index
    %8 = vector.load %arg4[%c0_6, %c0_7] : memref<128x128xf32, #tpu.memory_space<vmem>>, vector<128x128xf32>
    %cst_8 = arith.constant dense<0.000000e+00> : vector<16x128xf32>
    %9 = tpu.matmul %7, %8, %cst_8 {dimension_numbers = #tpu.dot_dimension_numbers<[1], [0], [0], [1], [0, 0, 1, 1], [], []>} : vector<16x128xf32>, vector<128x128xf32>, vector<16x128xf32> -> vector<16x128xf32>
    %c0_9 = arith.constant 0 : index
    %c0_10 = arith.constant 0 : index
    %10 = vector.load %arg5[%c0_9, %c0_10] : memref<1x128xf32, #tpu.memory_space<vmem>>, vector<1x128xf32>
    %11 = vector.broadcast %10 : vector<1x128xf32> to vector<16x128xf32>
    %12 = arith.addf %9, %11 : vector<16x128xf32>
    %c0_11 = arith.constant 0 : index
    %c0_12 = arith.constant 0 : index
    %13 = vector.load %arg6[%c0_11, %c0_12] : memref<16x128xf32, #tpu.memory_space<vmem>>, vector<16x128xf32>
    tpu.vector_store %arg6[%c0_11, %c0_12], %12 {strides = array<i32>} : memref<16x128xf32, #tpu.memory_space<vmem>>, vector<16x128xf32>,
    return
  }
  func.func @transform_0(%arg0: i32) -> (i32, i32) {
    %c0_i32 = arith.constant 0 : i32
    %c0_i32_0 = arith.constant 0 : i32
    return %arg0, %c0_i32 : i32, i32
  }
  func.func @transform_1(%arg0: i32) -> (i32, i32) {
    %c0_i32 = arith.constant 0 : i32
    %c0_i32_0 = arith.constant 0 : i32
    %c0_i32_1 = arith.constant 0 : i32
    return %c0_i32, %c0_i32_0 : i32, i32
  }
  func.func @transform_2(%arg0: i32) -> (i32, i32) {
    %c0_i32 = arith.constant 0 : i32
    %c0_i32_0 = arith.constant 0 : i32
    %c0_i32_1 = arith.constant 0 : i32
    return %c0_i32, %c0_i32_0 : i32, i32
  }
  func.func @transform_3(%arg0: i32) -> (i32, i32) {
    %c0_i32 = arith.constant 0 : i32
    %c0_i32_0 = arith.constant 0 : i32
    %c0_i32_1 = arith.constant 0 : i32
    return %c0_i32, %c0_i32_0 : i32, i32
  }
  func.func @transform_4(%arg0: i32) -> (i32, i32) {
    %c0_i32 = arith.constant 0 : i32
    %c0_i32_0 = arith.constant 0 : i32
    %c0_i32_1 = arith.constant 0 : i32
    return %c0_i32, %c0_i32_0 : i32, i32
  }
  func.func @transform_5(%arg0: i32) -> (i32, i32) {
    %c0_i32 = arith.constant 0 : i32
    %c0_i32_0 = arith.constant 0 : i32
    return %arg0, %c0_i32 : i32, i32
  }
}

</mosaic_0001>

<bundles_post_ra>
// kernel: _lambda_.1
= control target key start
LH: loop header
LB: loop body
LE: loop exit
PB: predicated region body
PF: predicated region fallthrough
CT: control target
= control target key end

     0   :  { %10 = vsyncpa [#allocation3], 0  ;;  %s610_s0 = inlined_call_operand.vmem [shape: f32[16,128], index: 0, kind: input, shape index: {}]   ;;  %s611_s1 = inlined_call_operand.hbm [shape: f32[128,128], index: 1, kind: input, shape index: {}]   ;;  %s612_s2 = inlined_call_operand.vmem [shape: f32[1,128], index: 2, kind: input, shape index: {}]   ;;  %s613_s3 = inlined_call_operand.hbm [shape: f32[128,128], index: 3, kind: input, shape index: {}]   ;;  %s614_s4 = inlined_call_operand.vmem [shape: f32[1,128], index: 4, kind: input, shape index: {}]   ;;  %s615_s5 = inlined_call_operand.hbm [shape: f32[16,128], index: 5, kind: output, shape index: {}]  }
   0x1   :  { %11 = vsyncpa [#allocation6], 0 }
   0x2   :  { %12 = vsyncpa [#allocation4], 0  ;;  %s518_s18 = smov [#allocation2]   ;;  %s446_s22 = scalar_lea.hbm %s611_s1, 2048 }
   0x3   :  { %s20_s19 = sshll.u32 %s518_s18, 4  ;;  %p447_p0 = scmp.ne.s32.totalorder %s611_s1, %s446_s22  ;;  %s21_s19 = int_to_ptr.vmem [resolvable:$true] %s20_s19 }
   0x4   :  { %p450_p1 = scmp.lt.u32.totalorder %s446_s22, %s611_s1 }
   0x6   :  { %p452_p2 = pnand %p450_p1, %p447_p0 }
   0x8   :  { %455 = shalt.err (!%p452_p2)
}
   0x9   :  { %s456_s27 = scalar_lea.vmem %s21_s19, 2048  ;;  %p461_p4 = scmp.lt.s32.totalorder %s21_s19, %s21_s19 }
   0xa   :  { %p457_p3 = scmp.ne.s32.totalorder %s21_s19, %s456_s27  ;;  %p462_p5 = scmp.lt.s32.totalorder %s456_s27, %s456_s27 }
   0xc   :  { %p463_p6 = por %p462_p5, %p461_p4 }
   0xe   :  { %p464_p7 = pnand %p463_p6, %p457_p3 }
  0x10   :  { %467 = shalt.err (!%p464_p7)
}
  0x11   :  { %s519_s28 = smov 128   ;;  %s520_s29 = smov 8  }
  0x12   :  { %26 = dma.hbm_to_vmem [thread:$0]  %s611_s1, 2048, %s21_s19, [#allocation3], %s519_s28, %s519_s28, %s520_s29  }
  0x13   :  { %s521_s7 = smov [#allocation5]   ;;  %s468_s11 = scalar_lea.hbm %s613_s3, 2048 }
  0x14   :  { %s34_s8 = sshll.u32 %s521_s7, 4  ;;  %p469_p8 = scmp.ne.s32.totalorder %s613_s3, %s468_s11  ;;  %s35_s8 = int_to_ptr.vmem [resolvable:$true] %s34_s8 }
  0x15   :  { %p472_p9 = scmp.lt.u32.totalorder %s468_s11, %s613_s3 }
  0x17   :  { %p474_p10 = pnand %p472_p9, %p469_p8 }
  0x19   :  { %477 = shalt.err (!%p474_p10)
}
  0x1a   :  { %s478_s16 = scalar_lea.vmem %s35_s8, 2048  ;;  %p483_p12 = scmp.lt.s32.totalorder %s35_s8, %s35_s8 }
  0x1b   :  { %p479_p11 = scmp.ne.s32.totalorder %s35_s8, %s478_s16  ;;  %p484_p13 = scmp.lt.s32.totalorder %s478_s16, %s478_s16 }
  0x1d   :  { %p485_p0 = por %p484_p13, %p483_p12 }
  0x1f   :  { %p486_p1 = pnand %p485_p0, %p479_p11 }
  0x21   :  { %489 = shalt.err (!%p486_p1)
}
  0x22   :  { %40 = dma.hbm_to_vmem [thread:$0]  %s613_s3, 2048, %s35_s8, [#allocation6], %s519_s28, %s519_s28, %s520_s29  }
  0x23   :  { %512 = dma.done.wait [#allocation3], 2048  }
  0x24   :  { %513 = vsyncadd [#allocation3], 4294965248 }
  0x25   :  { %514 = dma.done.wait [#allocation6], 2048  }
  0x26   :  { %515 = vsyncadd [#allocation6], 4294965248  ;;  %v51_v0 = vld [vmem:[#allocation2] sm:$0xff]  ;;  %v52_v1 = vld [vmem:[#allocation2 + $0x8] sm:$0xff]  ;;  %s522_s24 = smov [#allocation7]  }
  0x27   :  { %v53_v2 = vld [vmem:[#allocation2 + $0x10] sm:$0xff]  ;;  %v377_v3 = vpack.c.bf16 %v52_v1, %v51_v0  ;;  %v54_v4 = vld [vmem:[#allocation2 + $0x18] sm:$0xff]  ;;  %v55_v6 = vld [vmem:[#allocation2 + $0x20] sm:$0xff]  ;;  %s256_s25 = sshll.u32 %s522_s24, 4  ;;  %s257_s25 = int_to_ptr.vmem [resolvable:$true] %s256_s25 }
  0x28   :  { %v381_v5 = vpack.c.bf16 %v54_v4, %v53_v2  ;;  %v56_v7 = vld [vmem:[#allocation2 + $0x28] sm:$0xff]  ;;  %v57_v9 = vld [vmem:[#allocation2 + $0x30] sm:$0xff]  ;;  %v58_v10 = vld [vmem:[#allocation2 + $0x38] sm:$0xff]  ;;  %p495_p3 = scmp.lt.s32.totalorder %s257_s25, %s257_s25 }
  0x29   :  { %378 = vmatprep.subr.bf16.mxu0 %v377_v3  ;;  %v385_v8 = vpack.c.bf16 %v56_v7, %v55_v6  ;;  %v49_v11 = vld [vmem:[%s610_s0] sm:$0xff]  ;;  %v152_v13 = vld [vmem:[#allocation5 + $0x8] sm:$0xff]  ;;  %v153_v14 = vld [vmem:[#allocation5 + $0x10] sm:$0xff]  ;;  %v389_v20 = vpack.c.bf16 %v58_v10, %v57_v9 }
  0x2a   :  { %380 = vmatpush3.bf16.msra.mxu0 %v377_v3  ;;  %339 = vmatprep.mubr.f32.mxu0 %v49_v11  ;;  %v151_v12 = vld [vmem:[#allocation5] sm:$0xff]  ;;  %v154_v16 = vld [vmem:[#allocation5 + $0x18] sm:$0xff]  ;;  %v156_v19 = vld [vmem:[#allocation5 + $0x28] sm:$0xff] }
  0x2b   :  { %382 = vmatprep.subr.bf16.mxu0 %v381_v5  ;;  %v409_v15 = vpack.c.bf16 %v152_v13, %v151_v12  ;;  %v413_v17 = vpack.c.bf16 %v154_v16, %v153_v14  ;;  %v155_v18 = vld [vmem:[#allocation5 + $0x20] sm:$0xff]  ;;  %v60_v22 = vld [vmem:[#allocation2 + $0x48] sm:$0xff]  ;;  %v157_v24 = vld [vmem:[#allocation5 + $0x30] sm:$0xff] }
  0x2c   :  { %v59_v21 = vld [vmem:[#allocation2 + $0x40] sm:$0xff]  ;;  %v417_v23 = vpack.c.bf16 %v156_v19, %v155_v18  ;;  %v158_v25 = vld [vmem:[#allocation5 + $0x38] sm:$0xff]  ;;  %v61_v27 = vld [vmem:[#allocation2 + $0x50] sm:$0xff] }
  0x2d   :  { %410 = vmatprep.subr.bf16.mxu1 %v409_v15  ;;  %v393_v26 = vpack.c.bf16 %v60_v22, %v59_v21  ;;  %v62_v28 = vld [vmem:[#allocation2 + $0x58] sm:$0xff]  ;;  %v421_v29 = vpack.c.bf16 %v158_v25, %v157_v24  ;;  %v159_v30 = vld [vmem:[#allocation5 + $0x40] sm:$0xff]  ;;  %v160_v31 = vld [vmem:[#allocation5 + $0x48] sm:$0xff] }
  0x2e   :  { %384 = vmatpush3.bf16.msra.mxu0 %v381_v5  ;;  %412 = vmatpush3.bf16.msra.mxu1 %v409_v15  ;;  %v397_v32 = vpack.c.bf16 %v62_v28, %v61_v27  ;;  %v63_v33 = vld [vmem:[#allocation2 + $0x60] sm:$0xff]  ;;  %v64_v34 = vld [vmem:[#allocation2 + $0x68] sm:$0xff]  ;;  %v425_v35 = vpack.c.bf16 %v160_v31, %v159_v30  ;;  %v161_v36 = vld [vmem:[#allocation5 + $0x50] sm:$0xff] }
  0x2f   :  { %386 = vmatprep.subr.bf16.mxu0 %v385_v8  ;;  %414 = vmatprep.subr.bf16.mxu1 %v413_v17  ;;  %v162_v37 = vld [vmem:[#allocation5 + $0x58] sm:$0xff]  ;;  %v401_v38 = vpack.c.bf16 %v64_v34, %v63_v33  ;;  %v65_v39 = vld [vmem:[#allocation2 + $0x70] sm:$0xff]  ;;  %v163_v42 = vld [vmem:[#allocation5 + $0x60] sm:$0xff] }
  0x30   :  { %v66_v40 = vld [vmem:[#allocation2 + $0x78] sm:$0xff]  ;;  %v429_v41 = vpack.c.bf16 %v162_v37, %v161_v36  ;;  %v164_v43 = vld [vmem:[#allocation5 + $0x68] sm:$0xff]  ;;  %v165_v47 = vld [vmem:[#allocation5 + $0x70] sm:$0xff] }
  0x31   :  { %v405_v44 = vpack.c.bf16 %v66_v40, %v65_v39  ;;  %v433_v45 = vpack.c.bf16 %v164_v43, %v163_v42  ;;  %v50_v46 = vld [vmem:[%s610_s0 + $0x8] sm:$0xff]  ;;  %v166_v48 = vld [vmem:[#allocation5 + $0x78] sm:$0xff]  ;;  %v269_v50 = vld [vmem:[%s612_s2] ss:$0 sm:$0xff]  ;;  %s490_s2 = scalar_lea.vmem %s257_s25, 256 }
  0x32   :  { %388 = vmatpush3.bf16.msra.mxu0 %v385_v8  ;;  %416 = vmatpush3.bf16.msra.mxu1 %v413_v17  ;;  %v437_v49 = vpack.c.bf16 %v166_v48, %v165_v47  ;;  %v270_v57 = vld [vmem:[%s614_s4] ss:$0 sm:$0xff]  ;;  %p491_p2 = scmp.ne.s32.totalorder %s257_s25, %s490_s2  ;;  %p496_p4 = scmp.lt.s32.totalorder %s490_s2, %s490_s2 }
  0x33   :  { %390 = vmatprep.subr.bf16.mxu0 %v389_v20  ;;  %418 = vmatprep.subr.bf16.mxu1 %v417_v23 }
  0x34   :  { %p497_p5 = por %p496_p4, %p495_p3 }
  0x36   :  { %392 = vmatpush3.bf16.msra.mxu0 %v389_v20  ;;  %420 = vmatpush3.bf16.msra.mxu1 %v417_v23  ;;  %p498_p6 = pnand %p497_p5, %p491_p2 }
  0x37   :  { %394 = vmatprep.subr.bf16.mxu0 %v393_v26  ;;  %422 = vmatprep.subr.bf16.mxu1 %v421_v29 }
  0x3a   :  { %396 = vmatpush3.bf16.msra.mxu0 %v393_v26  ;;  %424 = vmatpush3.bf16.msra.mxu1 %v421_v29 }
  0x3b   :  { %398 = vmatprep.subr.bf16.mxu0 %v397_v32  ;;  %426 = vmatprep.subr.bf16.mxu1 %v425_v35 }
  0x3e   :  { %400 = vmatpush3.bf16.msra.mxu0 %v397_v32  ;;  %428 = vmatpush3.bf16.msra.mxu1 %v425_v35 }
  0x3f   :  { %402 = vmatprep.subr.bf16.mxu0 %v401_v38  ;;  %430 = vmatprep.subr.bf16.mxu1 %v429_v41 }
  0x42   :  { %404 = vmatpush3.bf16.msra.mxu0 %v401_v38  ;;  %432 = vmatpush3.bf16.msra.mxu1 %v429_v41 }
  0x43   :  { %406 = vmatprep.subr.bf16.mxu0 %v405_v44  ;;  %434 = vmatprep.subr.bf16.mxu1 %v433_v45 }
  0x46   :  { %408 = vmatpush3.bf16.msra.mxu0 %v405_v44  ;;  %436 = vmatpush3.bf16.msra.mxu1 %v433_v45 }
  0x47   :  { %438 = vmatprep.subr.bf16.mxu1 %v437_v49 }
  0x49   :  { %340 = vmatmul.mubr.f32.vlgmr.msra.gmra.mrb[0].mxu0 %v50_v46 }
  0x4a   :  { %440 = vmatpush3.bf16.msra.mxu1 %v437_v49 }
 0x11c   :  { %v341_v51 = vpop.f32.mrb[0].mxu0 }
 0x11d   :  { %v146_v52 = vadd.f32 %v341_v51, %v269_v50  ;;  %v140_v53 = vpop.f32.mrb[1].mxu0 }
 0x11e   :  { %v141_v54 = vadd.f32 %v269_v50, %v140_v53 }
 0x11f   :  { %v150_v56 = vmax.f32 %v146_v52, 0.0 }
 0x120   :  { %v149_v55 = vmax.f32 %v141_v54, 0.0 }
 0x122   :  { %374 = vmatprep.mubr.f32.mxu1 %v149_v55 }
 0x123   :  { %375 = vmatmul.mubr.f32.vlgmr.msra.gmra.mrb[0].mxu1 %v150_v56 }
 0x1f6   :  { %v376_v58 = vpop.f32.mrb[0].mxu1 }
 0x1f7   :  { %v246_v59 = vadd.f32 %v376_v58, %v270_v57  ;;  %v240_v60 = vpop.f32.mrb[1].mxu1 }
 0x1f8   :  { %v241_v61 = vadd.f32 %v270_v57, %v240_v60 }
 0x1f9   :  { %250 = vst [vmem:[#allocation7 + $0x8] sm:$0xff] %v246_v59 }
 0x1fa   :  { %249 = vst [vmem:[#allocation7] sm:$0xff] %v241_v61 }
 0x1fb   :  { %501 = shalt.err (!%p498_p6)
}
 0x1fc   :  { %s502_s4 = scalar_lea.hbm %s615_s5, 256 }
 0x1fd   :  { %p503_p7 = scmp.ne.s32.totalorder %s615_s5, %s502_s4  ;;  %p506_p8 = scmp.lt.u32.totalorder %s502_s4, %s615_s5 }
 0x1ff   :  { %p508_p9 = pnand %p506_p8, %p503_p7 }
 0x201   :  { %511 = shalt.err (!%p508_p9)
}
 0x202   :  { %262 = dma.vmem_to_hbm [thread:$0]  %s257_s25, 256, %s615_s5, [#allocation4], %s519_s28, %s519_s28, %s520_s29  }
 0x203   :  { %516 = dma.done.wait [#allocation4], 256  }
 0x204   :  { %517 = vsyncadd [#allocation4], 4294967040 }
 0x205   :  { %266 = vsyncpa [#allocation3], 1 }
 0x206   :  { %267 = vsyncpa [#allocation6], 1 }
 0x207   :  { %268 = vsyncpa [#allocation4], 1 }

</bundles_post_ra>
